<compile_context>
chip_gen: v7x
topology: tpu7x:2x2x1
jax: 0.10.0
libtpu: 0.0.40
codegen_flags: <defaults>
</compile_context>

<pallas_src>
import jax
import jax.numpy as jnp
from jax.experimental import pallas as pl
from jax.experimental.pallas import tpu as pltpu


# ---------------------------------------------------------------------------
# Kernel
# ---------------------------------------------------------------------------
def _row_argmax(x):
    """First-index argmax over the last axis of a (TB, N) tile -> (1, TB) i32."""
    n = x.shape[-1]
    m = jnp.max(x, axis=-1, keepdims=True)
    is_max = x == m
    if jnp.issubdtype(x.dtype, jnp.floating):
        # Match torch/jnp tie-breaking when a row contains NaN (NaN == max).
        is_max = jnp.logical_or(is_max, jnp.isnan(x))
    idx = jax.lax.broadcasted_iota(jnp.int32, x.shape, dimension=x.ndim - 1)
    cand = jnp.where(is_max, idx, jnp.int32(n))
    res = jnp.min(cand, axis=-1).astype(jnp.int32)  # (TB,)
    return res[None, :]                             # lane-dense (1, TB)


def _fused_argmax_kernel(logits_ref, label_ref, preds_ref, hards_ref):
    preds_ref[...] = _row_argmax(logits_ref[...])
    hards_ref[...] = _row_argmax(label_ref[...])


# ---------------------------------------------------------------------------
# Wrapper
# ---------------------------------------------------------------------------
def _round_up(x, m):
    return (x + m - 1) // m * m


def _pick_tile(b, n, itemsize_sum):
    """Batch-tile size: big enough to pipeline, small enough for scoped VMEM."""
    if b <= 512:
        # Single tile (block == full padded array); just align sublanes.
        return _round_up(b, 8)
    # Multi-tile: TB must be a multiple of 128 (lane-dense output blocks).
    # Keep 2 inputs x 2 double-buffers of one tile well under ~32 MiB scoped
    # VMEM (v7x default), with headroom.
    budget = 8 * 1024 * 1024
    for tb in (512, 256, 128):
        if 2 * tb * n * itemsize_sum <= budget:
            return tb
    return 128


def label_task_argmax(output: jax.Array, label: jax.Array):
    """Fused argmax over the last axis of `output` and `label` (both (B, N))."""
    assert output.ndim == 2 and label.ndim == 2
    assert output.shape[0] == label.shape[0]
    b, n_out = output.shape
    _, n_lab = label.shape

    if label.dtype == jnp.bool_:
        label = label.astype(jnp.int32)

    itemsize_sum = output.dtype.itemsize + label.dtype.itemsize
    tb = _pick_tile(b, max(n_out, n_lab), itemsize_sum)
    b_pad = _round_up(b, tb)
    if b_pad != b:
        output = jnp.pad(output, ((0, b_pad - b), (0, 0)))
        label = jnp.pad(label, ((0, b_pad - b), (0, 0)))

    grid = (b_pad // tb,)
    preds, hards = pl.pallas_call(
        _fused_argmax_kernel,
        out_shape=(
            jax.ShapeDtypeStruct((1, b_pad), jnp.int32),
            jax.ShapeDtypeStruct((1, b_pad), jnp.int32),
        ),
        grid=grid,
        in_specs=[
            pl.BlockSpec((tb, n_out), lambda i: (i, 0)),
            pl.BlockSpec((tb, n_lab), lambda i: (i, 0)),
        ],
        out_specs=[
            pl.BlockSpec((1, tb), lambda i: (0, i)),
            pl.BlockSpec((1, tb), lambda i: (0, i)),
        ],
        compiler_params=pltpu.CompilerParams(
            dimension_semantics=("parallel",),
        ),
    )(output, label)
    return preds[0, :b], hards[0, :b]


def label_task_forward(output: jax.Array, batch: dict) -> dict:
    """JAX/Pallas equivalent of LabelTask.forward."""
    label = batch["label"]
    preds, hards = label_task_argmax(output, label)
    return {"logits": output, "trues": label, "preds": preds, "hards": hards}
    # TODO(synk): loss_fn (MyBCELoss) / metrics (MulticlassF1Score) belong to
    # compute_loss / compute_metrics, not forward, so they are not ported here.


# ---------------------------------------------------------------------------
# Self-test
# ---------------------------------------------------------------------------
if __name__ == "__main__":
    key = jax.random.PRNGKey(0)
    k_out, k_lab, k_out2, k_lab2 = jax.random.split(key, 4)

    # --- small case consistent with the module: batch=8, num_label=32 -------
    batch_size, num_label = 8, 32
    output = jax.random.normal(k_out, (batch_size, num_label), dtype=jnp.float32)
    # Inject a NaN to exercise torch/jnp-matching tie-breaking.
    output = output.at[0, 3].set(jnp.nan)
    label_idx = jax.random.randint(k_lab, (batch_size,), 0, num_label)
    label = jax.nn.one_hot(label_idx, num_label, dtype=jnp.float32)
    batch = {"label": label}

    results = label_task_forward(output, batch)
    jax.block_until_ready(results)

    assert jnp.array_equal(results["preds"], jnp.argmax(output, axis=-1))
    assert jnp.array_equal(results["hards"], jnp.argmax(label, axis=-1))
    assert jnp.array_equal(results["logits"], output, equal_nan=True)
    assert jnp.array_equal(results["trues"], label)

    # --- larger case to exercise the tiled (multi-block, padded) path -------
    b2, n2 = 1100, 16
    out2 = jax.random.normal(k_out2, (b2, n2), dtype=jnp.float32)
    lab2 = jax.nn.one_hot(
        jax.random.randint(k_lab2, (b2,), 0, n2), n2, dtype=jnp.bfloat16
    )
    res2 = label_task_forward(out2, {"label": lab2})
    jax.block_until_ready(res2)
    assert jnp.array_equal(res2["preds"], jnp.argmax(out2, axis=-1))
    assert jnp.array_equal(res2["hards"], jnp.argmax(lab2, axis=-1))

    print("KERNEL_OK")
</pallas_src>

<mosaic_0001>
module attributes {stable_mosaic.version = 11 : i64} {
  func.func @_fused_argmax_kernel(%arg0: i32, %arg1: memref<8x32xf32, #tpu.memory_space<vmem>>, %arg2: memref<8x32xf32, #tpu.memory_space<vmem>>, %arg3: memref<1x8xi32, #tpu.memory_space<vmem>>, %arg4: memref<1x8xi32, #tpu.memory_space<vmem>>) attributes {dimension_semantics = [#tpu.dimension_semantics<parallel>], iteration_bounds = array<i64: 1>, scalar_prefetch = 0 : i64, scratch_operands = 0 : i64, tpu.core_type = #tpu.core_type<tc>, window_params = [{transform_indices = @transform_0, window_bounds = array<i64: 8, 32>}, {transform_indices = @transform_1, window_bounds = array<i64: 8, 32>}, {transform_indices = @transform_2, window_bounds = array<i64: 1, 8>}, {transform_indices = @transform_3, window_bounds = array<i64: 1, 8>}]} {
    %c0 = arith.constant 0 : index
    %c0_0 = arith.constant 0 : index
    %0 = vector.load %arg1[%c0, %c0_0] : memref<8x32xf32, #tpu.memory_space<vmem>>, vector<8x32xf32>
    %cst = arith.constant dense<0xFF800000> : vector<8xf32>
    %1 = vector.multi_reduction <maximumf>, %0, %cst [1] : vector<8x32xf32> to vector<8xf32>
    %2 = vector.shape_cast %1 : vector<8xf32> to vector<8x1xf32>
    %3 = vector.broadcast %2 : vector<8x1xf32> to vector<8x32xf32>
    %4 = arith.cmpf oeq, %0, %3 : vector<8x32xf32>
    %5 = arith.cmpf one, %0, %0 : vector<8x32xf32>
    %6 = arith.ori %4, %5 : vector<8x32xi1>
    %7 = tpu.iota {dimensions = array<i32: 1>} : vector<8x32xi32>
    %c32_i32 = arith.constant 32 : i32
    %8 = vector.broadcast %c32_i32 : i32 to vector<8x32xi32>
    %9 = arith.select %6, %7, %8 : vector<8x32xi1>, vector<8x32xi32>
    %cst_1 = arith.constant dense<2147483647> : vector<8xi32>
    %10 = vector.multi_reduction <minsi>, %9, %cst_1 [1] : vector<8x32xi32> to vector<8xi32>
    %11 = vector.shape_cast %10 : vector<8xi32> to vector<1x8xi32>
    %c0_2 = arith.constant 0 : index
    %c0_3 = arith.constant 0 : index
    %12 = vector.load %arg3[%c0_2, %c0_3] : memref<1x8xi32, #tpu.memory_space<vmem>>, vector<1x8xi32>
    tpu.vector_store %arg3[%c0_2, %c0_3], %11 {strides = array<i32>} : memref<1x8xi32, #tpu.memory_space<vmem>>, vector<1x8xi32>,
    %c0_4 = arith.constant 0 : index
    %c0_5 = arith.constant 0 : index
    %13 = vector.load %arg2[%c0_4, %c0_5] : memref<8x32xf32, #tpu.memory_space<vmem>>, vector<8x32xf32>
    %cst_6 = arith.constant dense<0xFF800000> : vector<8xf32>
    %14 = vector.multi_reduction <maximumf>, %13, %cst_6 [1] : vector<8x32xf32> to vector<8xf32>
    %15 = vector.shape_cast %14 : vector<8xf32> to vector<8x1xf32>
    %16 = vector.broadcast %15 : vector<8x1xf32> to vector<8x32xf32>
    %17 = arith.cmpf oeq, %13, %16 : vector<8x32xf32>
    %18 = arith.cmpf one, %13, %13 : vector<8x32xf32>
    %19 = arith.ori %17, %18 : vector<8x32xi1>
    %20 = tpu.iota {dimensions = array<i32: 1>} : vector<8x32xi32>
    %c32_i32_7 = arith.constant 32 : i32
    %21 = vector.broadcast %c32_i32_7 : i32 to vector<8x32xi32>
    %22 = arith.select %19, %20, %21 : vector<8x32xi1>, vector<8x32xi32>
    %cst_8 = arith.constant dense<2147483647> : vector<8xi32>
    %23 = vector.multi_reduction <minsi>, %22, %cst_8 [1] : vector<8x32xi32> to vector<8xi32>
    %24 = vector.shape_cast %23 : vector<8xi32> to vector<1x8xi32>
    %c0_9 = arith.constant 0 : index
    %c0_10 = arith.constant 0 : index
    %25 = vector.load %arg4[%c0_9, %c0_10] : memref<1x8xi32, #tpu.memory_space<vmem>>, vector<1x8xi32>
    tpu.vector_store %arg4[%c0_9, %c0_10], %24 {strides = array<i32>} : memref<1x8xi32, #tpu.memory_space<vmem>>, vector<1x8xi32>,
    return
  }
  func.func @transform_0(%arg0: i32) -> (i32, i32) {
    %c0_i32 = arith.constant 0 : i32
    %c0_i32_0 = arith.constant 0 : i32
    return %arg0, %c0_i32 : i32, i32
  }
  func.func @transform_1(%arg0: i32) -> (i32, i32) {
    %c0_i32 = arith.constant 0 : i32
    %c0_i32_0 = arith.constant 0 : i32
    return %arg0, %c0_i32 : i32, i32
  }
  func.func @transform_2(%arg0: i32) -> (i32, i32) {
    %c0_i32 = arith.constant 0 : i32
    %c0_i32_0 = arith.constant 0 : i32
    return %c0_i32, %arg0 : i32, i32
  }
  func.func @transform_3(%arg0: i32) -> (i32, i32) {
    %c0_i32 = arith.constant 0 : i32
    %c0_i32_0 = arith.constant 0 : i32
    return %c0_i32, %arg0 : i32, i32
  }
}

</mosaic_0001>

<bundles_post_ra>
// kernel: tpu_custom_call.1
= control target key start
LH: loop header
LB: loop body
LE: loop exit
PB: predicated region body
PF: predicated region fallthrough
CT: control target
= control target key end

     0   :  { %9 = vsyncpa [#allocation3], 0  ;;  %s307_s0 = inlined_call_operand.hbm [shape: f32[8,32], index: 0, kind: input, shape index: {}]   ;;  %s308_s1 = inlined_call_operand.hbm [shape: f32[8,32], index: 1, kind: input, shape index: {}]   ;;  %s309_s2 = inlined_call_operand.hbm [shape: s32[1,8], index: 2, kind: output, shape index: {0}]   ;;  %s310_s3 = inlined_call_operand.hbm [shape: s32[1,8], index: 3, kind: output, shape index: {1}]  }
   0x1   :  { %10 = vsyncpa [#allocation6], 0 }
   0x2   :  { %11 = vsyncpa [#allocation4], 0 }
   0x3   :  { %12 = vsyncpa [#allocation9], 0  ;;  %s229_s12 = smov [#allocation2]   ;;  %s230_s14 = smov [#allocation5]  }
   0x4   :  { %s19_s13 = sshll.u32 %s229_s12, 4  ;;  %s29_s15 = sshll.u32 %s230_s14, 4  ;;  %s20_s13 = int_to_ptr.vmem [resolvable:$true] %s19_s13  ;;  %s30_s15 = int_to_ptr.vmem [resolvable:$true] %s29_s15 }
   0x5   :  { %s133_s18 = scalar_lea.hbm %s307_s0, 128 }
   0x6   :  { %p134_p0 = scmp.ne.s32.totalorder %s307_s0, %s133_s18  ;;  %p137_p1 = scmp.lt.u32.totalorder %s133_s18, %s307_s0 }
   0x8   :  { %p139_p2 = pnand %p137_p1, %p134_p0 }
   0xa   :  { %142 = shalt.err (!%p139_p2)
}
   0xb   :  { %s143_s23 = scalar_lea.vmem %s20_s13, 128  ;;  %p148_p4 = scmp.lt.s32.totalorder %s20_s13, %s20_s13 }
   0xc   :  { %p144_p3 = scmp.ne.s32.totalorder %s20_s13, %s143_s23  ;;  %p149_p5 = scmp.lt.s32.totalorder %s143_s23, %s143_s23 }
   0xe   :  { %p150_p6 = por %p149_p5, %p148_p4 }
  0x10   :  { %p151_p7 = pnand %p150_p6, %p144_p3 }
  0x12   :  { %154 = shalt.err (!%p151_p7)
}
  0x13   :  { %22 = dma.hbm_to_vmem [thread:$0]  %s307_s0, 128, %s20_s13, [#allocation3]  }
  0x14   :  { %s155_s28 = scalar_lea.hbm %s308_s1, 128 }
  0x15   :  { %p156_p8 = scmp.ne.s32.totalorder %s308_s1, %s155_s28  ;;  %p159_p9 = scmp.lt.u32.totalorder %s155_s28, %s308_s1 }
  0x17   :  { %p161_p10 = pnand %p159_p9, %p156_p8 }
  0x19   :  { %164 = shalt.err (!%p161_p10)
}
  0x1a   :  { %s165_s6 = scalar_lea.vmem %s30_s15, 128  ;;  %p170_p12 = scmp.lt.s32.totalorder %s30_s15, %s30_s15 }
  0x1b   :  { %p166_p11 = scmp.ne.s32.totalorder %s30_s15, %s165_s6  ;;  %p171_p13 = scmp.lt.s32.totalorder %s165_s6, %s165_s6 }
  0x1d   :  { %p172_p0 = por %p171_p13, %p170_p12 }
  0x1f   :  { %p173_p1 = pnand %p172_p0, %p166_p11 }
  0x21   :  { %176 = shalt.err (!%p173_p1)
}
  0x22   :  { %32 = dma.hbm_to_vmem [thread:$0]  %s308_s1, 128, %s30_s15, [#allocation6]  }
  0x23   :  { %221 = dma.done.wait [#allocation3], 128  }
  0x24   :  { %222 = vsyncadd [#allocation3], 4294967168 }
  0x25   :  { %223 = dma.done.wait [#allocation6], 128  }
  0x26   :  { %224 = vsyncadd [#allocation6], 4294967168  ;;  %vm40_vm0 = vcmask 261120   ;;  %v39_v0 = vld [vmem:[#allocation2] sm:$0xff]  ;;  %v71_v1 = vld [vmem:[#allocation5] sm:$0xff]  ;;  %v47_v4 = vlaneseq  ;;  %s231_s1 = smov [#allocation7]  }
  0x27   :  { %v41_v2 = vsel %vm40_vm0, %v39_v0, -inf  ;;  %v72_v3 = vsel %vm40_vm0, %v71_v1, -inf  ;;  %vm45_vm1 = vcmp.ne.f32.partialorder %v39_v0, %v39_v0  ;;  %vm76_vm4 = vcmp.ne.f32.partialorder %v71_v1, %v71_v1  ;;  %s105_s8 = sshll.u32 %s231_s1, 4  ;;  %s232_s9 = smov [#allocation8]   ;;  %s106_s8 = int_to_ptr.vmem [resolvable:$true] %s105_s8 }
  0x28   :  { %42 = vmax.xlane.f32.xlu0 %v41_v2  ;;  %v48_v5 = vand.u32 127, %v47_v4  ;;  %v66_v25 = vshrl.u32 %v47_v4, 7  ;;  %vm69_vm9 = vcmask 57344   ;;  %s115_s10 = sshll.u32 %s232_s9, 4  ;;  %s177_s11 = scalar_lea.vmem %s106_s8, 16  ;;  %s116_s10 = int_to_ptr.vmem [resolvable:$true] %s115_s10 }
  0x29   :  { %p178_p2 = scmp.ne.s32.totalorder %s106_s8, %s177_s11  ;;  %s181_s12 = scalar_lea.vmem %s106_s8, 32 }
  0x2a   :  { %v67_v29 = vsub.s32 %v48_v5, %v66_v25  ;;  %p182_p3 = scmp.lt.s32.totalorder %s106_s8, %s106_s8  ;;  %p183_p4 = scmp.lt.s32.totalorder %s181_s12, %s177_s11 }
  0x2c   :  { %73 = vmax.xlane.f32.xlu0 %v72_v3  ;;  %p184_p5 = por %p183_p4, %p182_p3 }
  0x2e   :  { %p185_p6 = pnand %p184_p5, %p178_p2 }
  0xb5   :  { %v43_v6 = vpop.xlane.xlu0 %42 }
  0xb6   :  { %vm44_vm2 = vcmp.eq.f32.partialorder %v39_v0, %v43_v6 }
  0xb7   :  { %vm46_vm3 = vmor %vm44_vm2, %vm45_vm1 }
  0xb8   :  { %v49_v7 = vsel %vm46_vm3, %v48_v5, 32 }
  0xb9   :  { %v74_v8 = vpop.xlane.xlu0 %73  ;;  %v50_v9 = vsel %vm40_vm0, %v49_v7, 2147483647 }
  0xba   :  { %vm75_vm5 = vcmp.eq.f32.partialorder %v71_v1, %v74_v8  ;;  %v52_v10 = vshra.s32 %v50_v9, 16  ;;  %v51_v16 = vand.u32 65535, %v50_v9 }
  0xbb   :  { %vm77_vm6 = vmor %vm75_vm5, %vm76_vm4 }
  0xbc   :  { %v78_v11 = vsel %vm77_vm6, %v48_v5, 32  ;;  %v54_v12 = vcvt.s32.f32 %v52_v10  ;;  %v53_v18 = vcvt.s32.f32 %v51_v16 }
  0xbd   :  { %v79_v13 = vsel %vm40_vm0, %v78_v11, 2147483647 }
  0xbe   :  { %55 = vmin.xlane.f32.xlu1 %v54_v12  ;;  %v81_v14 = vshra.s32 %v79_v13, 16  ;;  %v80_v19 = vand.u32 65535, %v79_v13 }
  0xc0   :  { %v83_v15 = vcvt.s32.f32 %v81_v14  ;;  %v82_v22 = vcvt.s32.f32 %v80_v19 }
  0xc2   :  { %84 = vmin.xlane.f32.xlu1 %v83_v15 }
 0x14b   :  { %v56_v17 = vpop.xlane.xlu1 %55 }
 0x14c   :  { %vm57_vm7 = vcmp.eq.f32.partialorder %v54_v12, %v56_v17  ;;  %v62_v24 = vcvt.f32.s32 %v56_v17 }
 0x14d   :  { %v58_v20 = vsel %vm57_vm7, %v53_v18, inf }
 0x14e   :  { %59 = vmin.xlane.f32.xlu0 %v58_v20  ;;  %v63_v27 = vshll.u32 %v62_v24, 16 }
 0x14f   :  { %v85_v21 = vpop.xlane.xlu1 %84 }
 0x150   :  { %vm86_vm8 = vcmp.eq.f32.partialorder %v83_v15, %v85_v21  ;;  %v91_v28 = vcvt.f32.s32 %v85_v21 }
 0x151   :  { %v87_v23 = vsel %vm86_vm8, %v82_v22, inf }
 0x152   :  { %88 = vmin.xlane.f32.xlu1 %v87_v23  ;;  %v92_v33 = vshll.u32 %v91_v28, 16 }
 0x1db   :  { %v60_v26 = vpop.xlane.xlu0 %59 }
 0x1dc   :  { %v61_v30 = vcvt.f32.s32 %v60_v26 }
 0x1de   :  { %v64_v31 = vadd.s32 %v63_v27, %v61_v30 }
 0x1df   :  { %v89_v32 = vpop.xlane.xlu1 %88 }
 0x1e0   :  { %v68_v34 = vrot.slane %v64_v31, %v67_v29  ;;  %v90_v35 = vcvt.f32.s32 %v89_v32 }
 0x1e2   :  { %v93_v36 = vadd.s32 %v92_v33, %v90_v35  ;;  %70 = vst.msk [vmem:[#allocation7] sm:$0x1] %vm69_vm9, %v68_v34 }
 0x1e3   :  { %188 = shalt.err (!%p185_p6)
}
 0x1e4   :  { %s189_s15 = scalar_lea.hbm %s309_s2, 16 }
 0x1e5   :  { %p190_p7 = scmp.ne.s32.totalorder %s309_s2, %s189_s15  ;;  %p193_p8 = scmp.lt.u32.totalorder %s189_s15, %s309_s2 }
 0x1e7   :  { %p195_p9 = pnand %p193_p8, %p190_p7 }
 0x1e9   :  { %198 = shalt.err (!%p195_p9)
}
 0x1ea   :  { %108 = dma.vmem_to_hbm [thread:$0]  %s106_s8, 16, %s309_s2, [#allocation4]   ;;  %v97_v37 = vrot.slane %v93_v36, %v67_v29 }
 0x1eb   :  { %s199_s22 = scalar_lea.vmem %s116_s10, 16  ;;  %s203_s23 = scalar_lea.vmem %s116_s10, 32 }
 0x1ec   :  { %98 = vst.msk [vmem:[#allocation8] sm:$0x1] %vm69_vm9, %v97_v37  ;;  %p200_p10 = scmp.ne.s32.totalorder %s116_s10, %s199_s22  ;;  %p204_p11 = scmp.lt.s32.totalorder %s116_s10, %s116_s10 }
 0x1ed   :  { %p205_p12 = scmp.lt.s32.totalorder %s203_s23, %s199_s22 }
 0x1ef   :  { %p206_p13 = por %p205_p12, %p204_p11 }
 0x1f1   :  { %p207_p0 = pnand %p206_p13, %p200_p10 }
 0x1f3   :  { %210 = shalt.err (!%p207_p0)
}
 0x1f4   :  { %s211_s26 = scalar_lea.hbm %s310_s3, 16 }
 0x1f5   :  { %p212_p1 = scmp.ne.s32.totalorder %s310_s3, %s211_s26  ;;  %p215_p2 = scmp.lt.u32.totalorder %s211_s26, %s310_s3 }
 0x1f7   :  { %p217_p3 = pnand %p215_p2, %p212_p1 }
 0x1f9   :  { %220 = shalt.err (!%p217_p3)
}
 0x1fa   :  { %118 = dma.vmem_to_hbm [thread:$0]  %s116_s10, 16, %s310_s3, [#allocation9]  }
 0x1fb   :  { %225 = dma.done.wait [#allocation4], 16  }
 0x1fc   :  { %226 = vsyncadd [#allocation4], 4294967280 }
 0x1fd   :  { %227 = dma.done.wait [#allocation9], 16  }
 0x1fe   :  { %228 = vsyncadd [#allocation9], 4294967280 }
 0x1ff   :  { %125 = vsyncpa [#allocation3], 1 }
 0x200   :  { %126 = vsyncpa [#allocation6], 1 }
 0x201   :  { %127 = vsyncpa [#allocation4], 1 }
 0x202   :  { %128 = vsyncpa [#allocation9], 1 }

</bundles_post_ra>
